<compile_context>
chip_gen: v6e
topology: v6e:2x2x1
jax: 0.10.0
libtpu: 0.0.40
codegen_flags: <defaults>
</compile_context>

<pallas_src>
import jax
import jax.numpy as jnp
from jax.experimental import pallas as pl
from jax.experimental.pallas import tpu as pltpu


LANE = 128


def _round_up(x, m):
    return ((x + m - 1) // m) * m


def classifier_kernel(x_ref, w1_ref, b1_ref, w2_ref, b2_ref, o_ref):
    y_dim = o_ref.shape[1]

    # ---- dense: Linear(input_dim, h_dim) + ReLU ----------------------------
    # Cast the streamed x tile to bf16 for the MXU inside the kernel; the
    # accumulation, bias add and ReLU stay in f32.
    x = x_ref[...].astype(jnp.bfloat16)                                # [TB, D]
    h = jnp.dot(x, w1_ref[...], preferred_element_type=jnp.float32)    # [TB, H] f32
    h = jnp.maximum(h + b1_ref[...], 0.0)

    # ---- Dropout(0.5): identity at inference time --------------------------
    # TODO(synk): training-mode dropout would use pltpu.prng_seed/prng_random_bits.

    # ---- logits: Linear(h_dim, Y_PAD) — class axis padded to 128 lanes -----
    logits = jnp.dot(h.astype(w2_ref.dtype), w2_ref[...],
                     preferred_element_type=jnp.float32)               # [TB, 128] f32
    logits = logits + b2_ref[...]            # padded classes get a -1e30 bias

    # ---- Softmax over the class (lane) axis ---------------------------------
    # Padded columns underflow to exactly 0 mass after the max-subtract/exp.
    m = jnp.max(logits, axis=1, keepdims=True)
    e = jnp.exp(logits - m)
    denom = jnp.sum(e, axis=1, keepdims=True)
    probs = e * pl.reciprocal(denom, approx=True)   # EUP slot; rows sum to 1 ± ~1e-3

    # Narrow store: only the real y_dim classes go back to HBM.
    o_ref[...] = probs[:, :y_dim].astype(o_ref.dtype)


def classifier_forward(x, w1, b1, w2, b2, *, tile_b=4096):
    """x: [B, input_dim]; w1: [input_dim, h_dim]; b1: [h_dim] or [1, h_dim];
    w2: [h_dim, y_dim]; b2: [y_dim] or [1, y_dim].  Returns softmax probs
    [B, y_dim] (float32)."""
    B, D = x.shape
    H = w1.shape[1]
    Y = w2.shape[1]

    Y_PAD = _round_up(max(Y, LANE), LANE)   # lane-dense class axis, compute only

    # Small weights: bf16 for the MXU; biases stay f32. W2/b2 padded along the
    # class axis — padded columns get weight 0 and a huge negative bias so
    # they carry exactly zero softmax mass.
    w1b = w1.astype(jnp.bfloat16)
    b1f = b1.astype(jnp.float32).reshape(1, H)
    w2p = jnp.zeros((H, Y_PAD), jnp.bfloat16).at[:, :Y].set(w2.astype(jnp.bfloat16))
    b2p = jnp.full((1, Y_PAD), -1e30, jnp.float32).at[:, :Y].set(
        b2.astype(jnp.float32).reshape(1, Y))

    # Batch tiling: aim for >= 2 grid steps (v7x megacore) while capping the
    # per-step tile at tile_b. No input padding — Pallas masks the ragged
    # last block's out-of-bounds reads/writes, and rows never interact.
    target_steps = 2
    TILE_B = _round_up(min(tile_b, max(8, pl.cdiv(B, target_steps))), 8)
    grid_b = pl.cdiv(B, TILE_B)

    cost = pl.CostEstimate(
        flops=2 * grid_b * TILE_B * (D * H + H * Y_PAD),
        transcendentals=grid_b * TILE_B * (Y_PAD + 1),     # exp + reciprocal
        bytes_accessed=int(B * D * x.dtype.itemsize        # x read (in-kernel cast)
                           + w1b.size * 2 + w2p.size * 2   # bf16 weights
                           + b1f.size * 4 + b2p.size * 4   # f32 biases
                           + B * Y * 4),                   # narrow f32 output
    )

    return pl.pallas_call(
        classifier_kernel,
        out_shape=jax.ShapeDtypeStruct((B, Y), jnp.float32),
        grid_spec=pltpu.PrefetchScalarGridSpec(
            num_scalar_prefetch=0,
            grid=(grid_b,),
            in_specs=[
                pl.BlockSpec((TILE_B, D), lambda i: (i, 0)),   # x: batch-streamed
                pl.BlockSpec((D, H), lambda i: (0, 0)),        # w1: VMEM-resident
                pl.BlockSpec((1, H), lambda i: (0, 0)),        # b1: VMEM-resident
                pl.BlockSpec((H, Y_PAD), lambda i: (0, 0)),    # w2 (padded): resident
                pl.BlockSpec((1, Y_PAD), lambda i: (0, 0)),    # b2 (padded): resident
            ],
            out_specs=pl.BlockSpec((TILE_B, Y), lambda i: (i, 0)),
        ),
        compiler_params=pltpu.CompilerParams(
            dimension_semantics=("parallel",)),                # shard batch across TCs
        cost_estimate=cost,
    )(x, w1b, b1f, w2p, b2p)


def xavier_normal(key, fan_in, fan_out):
    # Matches nn.init.xavier_normal_ : std = sqrt(2 / (fan_in + fan_out))
    std = (2.0 / (fan_in + fan_out)) ** 0.5
    return jax.random.normal(key, (fan_in, fan_out), dtype=jnp.float32) * std


if __name__ == "__main__":
    # layer_size = [input_dim, h_dim, y_dim]
    input_dim, h_dim, y_dim = 32, 64, 16
    batch = 10   # deliberately not a multiple of 8 to exercise the ragged last block

    key = jax.random.PRNGKey(0)
    kx, kw1, kw2 = jax.random.split(key, 3)

    x = jax.random.normal(kx, (batch, input_dim), dtype=jnp.float32)

    # Deterministic parameter init mirroring the PyTorch module's __init__.
    w1 = xavier_normal(kw1, input_dim, h_dim)          # dense weight (stored [in, out])
    b1 = jnp.full((1, h_dim), 0.1, dtype=jnp.float32)  # dense bias = 0.1
    w2 = xavier_normal(kw2, h_dim, y_dim)              # logits weight (stored [in, out])
    b2 = jnp.full((1, y_dim), 0.1, dtype=jnp.float32)  # logits bias = 0.1

    out = classifier_forward(x, w1, b1, w2, b2)
    out = jax.block_until_ready(out)
    assert out.shape == (batch, y_dim)

    # Reference 1: mirrors the kernel's bf16-input / f32-accumulate path.
    xb16, w1b16, w2b16 = (a.astype(jnp.bfloat16) for a in (x, w1, w2))
    h_ref = jnp.maximum(jnp.dot(xb16, w1b16, preferred_element_type=jnp.float32) + b1, 0.0)
    logits_ref = jnp.dot(h_ref.astype(jnp.bfloat16), w2b16,
                         preferred_element_type=jnp.float32) + b2
    probs_bf16_ref = jax.nn.softmax(logits_ref, axis=1)
    assert jnp.allclose(out, probs_bf16_ref, atol=5e-3, rtol=5e-3)

    # Reference 2: pure f32 eval-mode forward (loose bound for the bf16 cast).
    probs_f32_ref = jax.nn.softmax(jnp.maximum(x @ w1 + b1, 0.0) @ w2 + b2, axis=1)
    assert jnp.allclose(out, probs_f32_ref, atol=3e-2, rtol=3e-2)

    # Probabilities sum to 1 (padded classes contribute exactly zero mass;
    # approx reciprocal keeps this within ~1e-3).
    assert jnp.allclose(jnp.sum(out, axis=1), 1.0, atol=5e-3)

    print("KERNEL_OK")
</pallas_src>

<mosaic_0001>
module attributes {stable_mosaic.version = 11 : i64} {
  func.func @classifier_kernel(%arg0: i32, %arg1: memref<8x32xf32, #tpu.memory_space<vmem>>, %arg2: memref<32x64xbf16, #tpu.memory_space<vmem>>, %arg3: memref<1x64xf32, #tpu.memory_space<vmem>>, %arg4: memref<64x128xbf16, #tpu.memory_space<vmem>>, %arg5: memref<1x128xf32, #tpu.memory_space<vmem>>, %arg6: memref<8x16xf32, #tpu.memory_space<vmem>>) attributes {dimension_semantics = [#tpu.dimension_semantics<parallel>], iteration_bounds = array<i64: 2>, scalar_prefetch = 0 : i64, scratch_operands = 0 : i64, tpu.core_type = #tpu.core_type<tc>, window_params = [{transform_indices = @transform_0, window_bounds = array<i64: 8, 32>}, {pipeline_mode = #tpu.pipeline_mode<synchronous>, transform_indices = @transform_1, window_bounds = array<i64: 32, 64>}, {pipeline_mode = #tpu.pipeline_mode<synchronous>, transform_indices = @transform_2, window_bounds = array<i64: 1, 64>}, {pipeline_mode = #tpu.pipeline_mode<synchronous>, transform_indices = @transform_3, window_bounds = array<i64: 64, 128>}, {pipeline_mode = #tpu.pipeline_mode<synchronous>, transform_indices = @transform_4, window_bounds = array<i64: 1, 128>}, {transform_indices = @transform_5, window_bounds = array<i64: 8, 16>}]} {
    %c0 = arith.constant 0 : index
    %c0_0 = arith.constant 0 : index
    %0 = vector.load %arg1[%c0, %c0_0] : memref<8x32xf32, #tpu.memory_space<vmem>>, vector<8x32xf32>
    %1 = arith.truncf %0 : vector<8x32xf32> to vector<8x32xbf16>
    %c0_1 = arith.constant 0 : index
    %c0_2 = arith.constant 0 : index
    %2 = vector.load %arg2[%c0_1, %c0_2] : memref<32x64xbf16, #tpu.memory_space<vmem>>, vector<32x64xbf16>
    %cst = arith.constant dense<0.000000e+00> : vector<8x64xf32>
    %3 = tpu.matmul %1, %2, %cst {dimension_numbers = #tpu.dot_dimension_numbers<[1], [0], [0], [1], [0, 0, 1, 1], [], []>} : vector<8x32xbf16>, vector<32x64xbf16>, vector<8x64xf32> -> vector<8x64xf32>
    %c0_3 = arith.constant 0 : index
    %c0_4 = arith.constant 0 : index
    %4 = vector.load %arg3[%c0_3, %c0_4] : memref<1x64xf32, #tpu.memory_space<vmem>>, vector<1x64xf32>
    %5 = vector.broadcast %4 : vector<1x64xf32> to vector<8x64xf32>
    %6 = arith.addf %3, %5 : vector<8x64xf32>
    %cst_5 = arith.constant 0.000000e+00 : f32
    %7 = vector.broadcast %cst_5 : f32 to vector<8x64xf32>
    %8 = arith.maximumf %6, %7 : vector<8x64xf32>
    %9 = arith.truncf %8 : vector<8x64xf32> to vector<8x64xbf16>
    %c0_6 = arith.constant 0 : index
    %c0_7 = arith.constant 0 : index
    %10 = vector.load %arg4[%c0_6, %c0_7] : memref<64x128xbf16, #tpu.memory_space<vmem>>, vector<64x128xbf16>
    %cst_8 = arith.constant dense<0.000000e+00> : vector<8x128xf32>
    %11 = tpu.matmul %9, %10, %cst_8 {dimension_numbers = #tpu.dot_dimension_numbers<[1], [0], [0], [1], [0, 0, 1, 1], [], []>} : vector<8x64xbf16>, vector<64x128xbf16>, vector<8x128xf32> -> vector<8x128xf32>
    %c0_9 = arith.constant 0 : index
    %c0_10 = arith.constant 0 : index
    %12 = vector.load %arg5[%c0_9, %c0_10] : memref<1x128xf32, #tpu.memory_space<vmem>>, vector<1x128xf32>
    %13 = vector.broadcast %12 : vector<1x128xf32> to vector<8x128xf32>
    %14 = arith.addf %11, %13 : vector<8x128xf32>
    %cst_11 = arith.constant dense<0xFF800000> : vector<8xf32>
    %15 = vector.multi_reduction <maximumf>, %14, %cst_11 [1] : vector<8x128xf32> to vector<8xf32>
    %16 = vector.shape_cast %15 : vector<8xf32> to vector<8x1xf32>
    %17 = vector.broadcast %16 : vector<8x1xf32> to vector<8x128xf32>
    %18 = arith.subf %14, %17 : vector<8x128xf32>
    %19 = math.exp %18 : vector<8x128xf32>
    %cst_12 = arith.constant dense<0.000000e+00> : vector<8xf32>
    %20 = vector.multi_reduction <add>, %19, %cst_12 [1] : vector<8x128xf32> to vector<8xf32>
    %21 = vector.shape_cast %20 : vector<8xf32> to vector<8x1xf32>
    %22 = tpu.reciprocal %21 {approx = true} : vector<8x1xf32> -> vector<8x1xf32>
    %23 = vector.broadcast %22 : vector<8x1xf32> to vector<8x128xf32>
    %24 = arith.mulf %19, %23 : vector<8x128xf32>
    %25 = vector.extract_strided_slice %24 {offsets = [0, 0], sizes = [8, 16], strides = [1, 1]} : vector<8x128xf32> to vector<8x16xf32>
    %c0_13 = arith.constant 0 : index
    %c0_14 = arith.constant 0 : index
    %26 = vector.load %arg6[%c0_13, %c0_14] : memref<8x16xf32, #tpu.memory_space<vmem>>, vector<8x16xf32>
    tpu.vector_store %arg6[%c0_13, %c0_14], %25 {strides = array<i32>} : memref<8x16xf32, #tpu.memory_space<vmem>>, vector<8x16xf32>,
    return
  }
  func.func @transform_0(%arg0: i32) -> (i32, i32) {
    %c0_i32 = arith.constant 0 : i32
    %c0_i32_0 = arith.constant 0 : i32
    return %arg0, %c0_i32 : i32, i32
  }
  func.func @transform_1(%arg0: i32) -> (i32, i32) {
    %c0_i32 = arith.constant 0 : i32
    %c0_i32_0 = arith.constant 0 : i32
    %c0_i32_1 = arith.constant 0 : i32
    return %c0_i32, %c0_i32_0 : i32, i32
  }
  func.func @transform_2(%arg0: i32) -> (i32, i32) {
    %c0_i32 = arith.constant 0 : i32
    %c0_i32_0 = arith.constant 0 : i32
    %c0_i32_1 = arith.constant 0 : i32
    return %c0_i32, %c0_i32_0 : i32, i32
  }
  func.func @transform_3(%arg0: i32) -> (i32, i32) {
    %c0_i32 = arith.constant 0 : i32
    %c0_i32_0 = arith.constant 0 : i32
    %c0_i32_1 = arith.constant 0 : i32
    return %c0_i32, %c0_i32_0 : i32, i32
  }
  func.func @transform_4(%arg0: i32) -> (i32, i32) {
    %c0_i32 = arith.constant 0 : i32
    %c0_i32_0 = arith.constant 0 : i32
    %c0_i32_1 = arith.constant 0 : i32
    return %c0_i32, %c0_i32_0 : i32, i32
  }
  func.func @transform_5(%arg0: i32) -> (i32, i32) {
    %c0_i32 = arith.constant 0 : i32
    %c0_i32_0 = arith.constant 0 : i32
    return %arg0, %c0_i32 : i32, i32
  }
}

</mosaic_0001>

<bundles_post_ra>
// kernel: tpu_custom_call.1
= control target key start
LH: loop header
LB: loop body
LE: loop exit
PB: predicated region body
PF: predicated region fallthrough
CT: control target
= control target key end

     0   :  { %10 = vsyncpa [#allocation3], 0  ;;  %s1036_s0 = inlined_call_operand.hbm [shape: f32[10,32], index: 0, kind: input, shape index: {}]   ;;  %s1037_s1 = inlined_call_operand.hbm [shape: bf16[32,64], index: 1, kind: input, shape index: {}]   ;;  %s1038_s2 = inlined_call_operand.vmem [shape: f32[1,64], index: 2, kind: input, shape index: {}]   ;;  %s1039_s3 = inlined_call_operand.hbm [shape: bf16[64,128], index: 3, kind: input, shape index: {}]   ;;  %s1040_s4 = inlined_call_operand.vmem [shape: f32[1,128], index: 4, kind: input, shape index: {}]   ;;  %s1041_s5 = inlined_call_operand.hbm [shape: f32[10,16], index: 5, kind: output, shape index: {}]  }
   0x1   :  { %12 = vsyncpa [#allocation3 + $0x1], 0 }
   0x2   :  { %13 = vsyncpa [#allocation6], 0 }
   0x3   :  { %14 = vsyncpa [#allocation4], 0 }
   0x4   :  { %16 = vsyncpa [#allocation4 + $0x1], 0  ;;  %s861_s18 = smov 0   ;;  %s863_s19 = smov 0  }
   0x5   :  { %s865_s20 = smov 0   ;;  %s867_s21 = smov 0  }
   0x6 LB: > { %s882_s22 = sadd.s32 4294967295, %s821_s21   ;;  %s538_s23 = sadd.s32 4294967294, %s821_s21   ;;  %s821_s21 = sphi %s867_s21, %s1063_s21   ;;  %s817_s20 = sphi %s865_s20, %s1062_s20   ;;  %s813_s19 = sphi %s863_s19, %s1061_s19   ;;  %s809_s18 = sphi %s861_s18, %s1060_s18  }
   0x7   : > { %p42_p0 = scmp.ne.s32.totalorder %s813_s19, %s809_s18  ;;  %p1042_p1 = scmp.eq.s32.totalorder %s882_s22, 0 }
   0x8   : > { %p156_p3 = scmp.eq.s32.totalorder %s538_s23, 1  ;;  %p539_p5 = scmp.ge.s32.totalorder %s821_s21, 1 }
   0x9   : > { %p891_p4 = por %p1042_p1, %p42_p0  ;;  %p163_p7 = scmp.lt.s32.totalorder %s821_s21, 3 }
   0xa   : > { %p896_p6 = por %p156_p3, %p42_p0  ;;  %s823_s27 = smov [#allocation5]  }
   0xb   : > { %s1046_s24 = scalar_select %p891_p4, 1, 0 }
   0xc   : > { %s1047_s25 = scalar_select %p896_p6, 1, 0 }
   0xd   : > { %p901_p8 = pnand %p539_p5, %p163_p7  ;;  %s175_s28 = sshll.u32 %s823_s27, 4  ;;  %s176_s28 = int_to_ptr.vmem [resolvable:$true] %s175_s28 }
   0xe   : > { %s824_s30 = smov [#allocation7]   ;;  %s684_s7 = scalar_lea.vmem %s176_s28, 256 }
   0xf   : > { %s1048_s26 = scalar_select %p901_p8, 1, 0 }
  0x10   : > { %p604_p9 = pneg %p901_p8  ;;  %s191_s6 = sshll.u32 %s824_s30, 4  ;;  %s192_s6 = int_to_ptr.vmem [resolvable:$true] %s191_s6 }
  0x11   : > { %p685_p13 = scmp.ne.s32.totalorder %s176_s28, %s684_s7  ;;  %p692_p5 = scmp.lt.s32.totalorder %s176_s28, %s176_s28 }
  0x12   : > { %p910_p11 = pnand %p604_p9, %p1042_p1  ;;  %p693_p7 = scmp.lt.s32.totalorder %s684_s7, %s684_s7 }
  0x14   : > { %p675_p12 = pneg %p910_p11  ;;  %p694_p10 = por %p693_p7, %p692_p5 }
  0x16   : > { %p687_p0 = pnand %p685_p13, %p675_p12 }
  0x18   : > { %p688_p3 = pneg %p687_p0 }
  0x1a   : > { %p695_p9 = pnand %p694_p10, %p688_p3 }
  0x1c   : > { %698 = shalt.err (!%p695_p9)
}
  0x1d   : > { %s825_s8 = smov 64   ;;  %s826_s9 = smov 4  }
  0x1e   : > { %607 = dma.hbm_to_vmem [thread:$0]  (!%p910_p11), %s1037_s1, 256, %s176_s28, [#allocation6], %s825_s8, %s825_s8, %s826_s9  }
  0x1f   : > { %s710_s12 = scalar_lea.vmem %s192_s6, 512  ;;  %p718_p2 = scmp.lt.s32.totalorder %s192_s6, %s192_s6 }
  0x20   : > { %p711_p1 = scmp.ne.s32.totalorder %s192_s6, %s710_s12  ;;  %p719_p6 = scmp.lt.s32.totalorder %s710_s12, %s710_s12 }
  0x22   : > { %p713_p13 = pnand %p711_p1, %p675_p12  ;;  %p720_p5 = por %p719_p6, %p718_p2 }
  0x24   : > { %p714_p0 = pneg %p713_p13 }
  0x26   : > { %p721_p10 = pnand %p720_p5, %p714_p0 }
  0x28   : > { %724 = shalt.err (!%p721_p10)
}
  0x29   : > { %610 = dma.hbm_to_vmem [thread:$0]  (!%p910_p11), %s1039_s3, 512, %s192_s6, [#allocation6], %s825_s8, %s825_s8, %s826_s9  }
  0x2a   : > { %s933_s15 = sadd.s32 1, %s821_s21   ;;  %s29_s16 = sadd.s32 1, %s817_s20 }
  0x2b   : > { %s26_s17 = ssub.s32 %s821_s21, %s933_s15  ;;  %p36_p1 = scmp.ne.s32.totalorder %s817_s20, %s813_s19 }
  0x2c   : > { %p27_p2 = scmp.eq.s32.totalorder %s26_s17, 0  ;;  %p37_p6 = scmp.eq.s32.totalorder %s821_s21, 0 }
  0x2d   : > { %p1050_p12 = scmp.eq.s32.totalorder %s882_s22, 1  ;;  %p621_p7 = scmp.lt.s32.totalorder %s821_s21, 2 }
  0x2e   : > { %s949_s27 = scalar_select %p27_p2, %s817_s20, %s29_s16  }
  0x2f   : > { %p943_p3 = por %p1050_p12, %p36_p1  ;;  %p38_p9 = por %p37_p6, %p36_p1 }
  0x30   : > { %s208_s28 = sand.u32 1, %s817_s20   ;;  %s544_s30 = sshll.u32 %s821_s21, 7 }
  0x31   : > { %s1051_s23 = scalar_select %p943_p3, 1, 0 }
  0x32   : > { %s543_s29 = sshll.u32 %s208_s28, 3  ;;  %s956_s8 = scalar_lea.hbm %s1036_s0, %s544_s30 }
  0x33   : > { %s212_s9 = scalar_lea.vmem [#allocation2], %s543_s29  ;;  %p958_p11 = pnand %p621_p7, %p38_p9 }
  0x34   : > { %s219_s10 = sshll.u32 %s212_s9, 4  ;;  %s209_s12 = scalar_lea.sflag [#allocation3], %s208_s28  ;;  %s220_s10 = int_to_ptr.vmem [resolvable:$true] %s219_s10 }
  0x35   : > { %s725_s13 = scalar_lea.hbm %s956_s8, 128  ;;  %p727_p0 = pneg %p958_p11 }
  0x36   : > { %p726_p13 = scmp.ne.s32.totalorder %s956_s8, %s725_s13  ;;  %s730_s17 = scalar_lea.hbm %s1036_s0, 256 }
  0x37   : > { %p731_p1 = scmp.lt.s32.totalorder %s956_s8, %s1036_s0  ;;  %p732_p2 = scmp.lt.s32.totalorder %s730_s17, %s725_s13 }
  0x38   : > { %p728_p5 = pnand %p727_p0, %p726_p13 }
  0x39   : > { %p733_p6 = por %p732_p2, %p731_p1 }
  0x3a   : > { %p729_p10 = pneg %p728_p5 }
  0x3c   : > { %p734_p12 = pnand %p733_p6, %p729_p10 }
  0x3e   : > { %737 = shalt.err (!%p734_p12)
}
  0x3f   : > { %s738_s6 = scalar_lea.vmem %s220_s10, 128  ;;  %s827_s28 = smov [#allocation2]  }
  0x40   : > { %p739_p7 = scmp.ne.s32.totalorder %s220_s10, %s738_s6  ;;  %s743_s7 = sshll.u32 %s827_s28, 4  ;;  %s744_s7 = int_to_ptr.vmem [resolvable:$false] %s743_s7 }
  0x41   : > { %s745_s9 = scalar_lea.vmem %s744_s7, 256  ;;  %p746_p13 = scmp.lt.s32.totalorder %s220_s10, %s744_s7 }
  0x42   : > { %p741_p9 = pnand %p739_p7, %p727_p0  ;;  %p747_p5 = scmp.lt.s32.totalorder %s745_s9, %s738_s6 }
  0x44   : > { %p742_p3 = pneg %p741_p9  ;;  %p748_p4 = por %p747_p5, %p746_p13 }
  0x46   : > { %p749_p8 = pnand %p748_p4, %p742_p3 }
  0x48   : > { %752 = shalt.err (!%p749_p8)
}
  0x49   : > { %614 = dma.hbm_to_vmem [thread:$0]  (!%p958_p11), %s956_s8, 128, %s220_s10, %s209_s12  }
  0x4a   : > { %p1053_p10 = scmp.ne.s32.totalorder %s1048_s26, 0 }
  0x4b   : > { %s979_s13 = sand.u32 (!%p1053_p10), 1, %s813_s19   ;;  %p1054_p4 = scmp.ne.s32.totalorder (!%p1053_p10), %s1046_s24, 0 }
  0x4c   : > { %228 = sbr.rel (%p1053_p10) target bundleno = 812 (0x32c), region = 40  ;;  %s546_s14 = sshll.u32 (!%p1053_p10), %s979_s13, 3 }
  0x4d   : > { %s231_s16 = scalar_lea.sflag (!%p1053_p10), [#allocation3], %s979_s13  ;;  %s234_s17 = scalar_lea.vmem (!%p1053_p10), [#allocation2], %s546_s14 }
  0x51   : > { %796 = dma.done.wait (%p1054_p4), %s231_s16, 128  }
  0x52   : > { %798 = vsyncadd (%p1054_p4), %s231_s16, 4294967168  ;;  %p1055_p8 = scmp.eq.s32.totalorder %s882_s22, 0 }
  0x54   : > { %800 = dma.done.wait (%p1055_p8), [#allocation6], 768   ;;  %p1056_p3 = pmov %p1055_p8 }
  0x55   : > { %v828_v0 = vmov 0.0   ;;  %vm829_vm0 = vmmov 0   ;;  %v663_v1 = vld [vmem:[#allocation5 + $0x8] sm:$0xff]   ;;  %v664_v2 = vld [vmem:[#allocation5] sm:$0xff]   ;;  %v270_v3 = vld [vmem:[%s234_s17] sm:$0xff]  ;;  %vm295_vm1 = vcmask 261120  }
  0x56   : > { %802 = vsyncadd (%p1056_p3), [#allocation6], 4294966528  ;;  %572 = vmatprep.subr.bf16.mxu0 %v828_v0  ;;  %576 = vmatprep.mubr.msk.bf16.mxu0 %vm829_vm0, %v828_v0  ;;  %v665_v4 = vld [vmem:[#allocation7 + $0x18] sm:$0xff]   ;;  %v666_v5 = vld [vmem:[#allocation7 + $0x10] sm:$0xff]   ;;  %v271_v6 = vpack.c.bf16 %v270_v3, %v270_v3  ;;  %vm380_vm2 = vcmask 523264   ;;  %s561_s11 = sshll.u32 %s882_s22, 7 }
  0x57   : > { %580 = vmatprep.subr.bf16.mxu1 %v828_v0  ;;  %588 = vmatprep.mubr.msk.bf16.mxu1 %vm829_vm0, %v828_v0  ;;  %v667_v7 = vld [vmem:[#allocation7 + $0x8] sm:$0xff]   ;;  %v668_v8 = vld [vmem:[#allocation7] sm:$0xff]   ;;  %s268_s12 = scalar_lea.vmem [#allocation8], %s546_s14  ;;  %vm433_vm3 = vcmask 130048   ;;  %s447_s28 = scalar_lea.hbm %s1041_s5, %s561_s11 }
  0x58   : > { %573 = vmatpush3.bf16.msra.mxu0 %v663_v1  ;;  %581 = vmatpush3.bf16.msra.mxu1 %v665_v4  ;;  %v550_v9 = vld [vmem:[%s1038_s2] ss:$0 sm:$0xff]  ;;  %s449_s30 = sshll.u32 %s268_s12, 4  ;;  %s436_s7 = scalar_lea.sflag [#allocation4], %s979_s13  ;;  %s450_s30 = int_to_ptr.vmem [resolvable:$true] %s449_s30 }
  0x59   : > { %574 = vmatprep.subr.bf16.mxu0 %v828_v0  ;;  %582 = vmatprep.subr.bf16.mxu1 %v828_v0  ;;  %v554_v17 = vld [vmem:[%s1040_s4] ss:$0 sm:$0xff]  ;;  %s753_s9 = scalar_lea.vmem %s450_s30, 128  ;;  %p1057_p0 = scmp.ne.s32.totalorder %s1051_s23, 0 }
  0x5a   : > { %p754_p11 = scmp.ne.s32.totalorder %s450_s30, %s753_s9  ;;  %s830_s16 = smov [#allocation8]  }
  0x5b   : > { %s757_s22 = sshll.u32 %s830_s16, 4  ;;  %s758_s22 = int_to_ptr.vmem [resolvable:$false] %s757_s22 }
  0x5c   : > { %575 = vmatpush3.bf16.msra.mxu0 %v664_v2  ;;  %583 = vmatpush3.bf16.msra.mxu1 %v666_v5  ;;  %p755_p1 = pnand %p754_p11, %p1057_p0  ;;  %s759_s14 = scalar_lea.vmem %s758_s22, 256 }
  0x5d   : > { %584 = vmatprep.subr.bf16.mxu1 %v828_v0  ;;  %p760_p6 = scmp.lt.s32.totalorder %s450_s30, %s758_s22  ;;  %p761_p12 = scmp.lt.s32.totalorder %s759_s14, %s753_s9 }
  0x5e   : > { %p756_p2 = pneg %p755_p1 }
  0x5f   : > { %577 = vmatmul.mubr.msk.bf16.vlgmr.msra.gmra.mxu0 %vm295_vm1, %v271_v6  ;;  %p762_p7 = por %p761_p12, %p760_p6 }
  0x60   : > { %585 = vmatpush3.bf16.msra.mxu1 %v667_v7 }
  0x61   : > { %586 = vmatprep.subr.bf16.mxu1 %v828_v0  ;;  %p763_p9 = pnand %p762_p7, %p756_p2 }
  0x64   : > { %587 = vmatpush3.bf16.msra.mxu1 %v668_v8 }
 0x11f   : > { %v333_v10 = vpop.f32.mrf.mxu0 }
 0x120   : > { %v334_v11 = vadd.f32 %v550_v9, %v333_v10 }
 0x121   : > { %v578_v12 = vpop.f32.mrf.mxu0 }
 0x122   : > { %v339_v13 = vmax.f32 %v334_v11, 0.0 }
 0x123   : > { %v336_v14 = vpop.f32.mrf.mxu0 }
 0x124   : > { %v340_v15 = vpack.c.bf16 %v339_v13, %v339_v13 }
 0x125   : > { %v579_v16 = vpop.f32.mrf.mxu0 }
 0x126   : > { %589 = vmatmul.mubr.msk.bf16.vlgmr.msra.gmra.mxu1 %vm380_vm2, %v340_v15 }
 0x1e6   : > { %v418_v18 = vpop.f32.mrf.mxu1 }
 0x1e7   : > { %v419_v19 = vadd.f32 %v554_v17, %v418_v18 }
 0x1e8   : > { %v590_v20 = vpop.f32.mrf.mxu1 }
 0x1e9   : > { %424 = vmax.xlane.f32.xlu0 %v419_v19 }
 0x1ea   : > { %v421_v21 = vpop.f32.mrf.mxu1 }
 0x1ec   : > { %v591_v22 = vpop.f32.mrf.mxu1 }
 0x272   : > { %v425_v23 = vpop.xlane.xlu0 %424 }
 0x273   : > { %v426_v24 = vsub.f32 %v419_v19, %v425_v23 }
 0x275   : > { %v427_v25 = vmul.f32 1.442695, %v426_v24 }
 0x277   : > { %669 = vpow2.f32 %v427_v25 }
 0x284   : > { %v670_v26 = vpop.eup %669 }
 0x285   : > { %429 = vadd.xlane.f32.xlu0 %v670_v26 }
 0x30e   : > { %v430_v27 = vpop.xlane.xlu0 %429 }
 0x30f   : > { %671 = vrcp.f32 %v430_v27 }
 0x31c   : > { %v672_v28 = vpop.eup %671 }
 0x31d   : > { %v432_v29 = vmul.f32 %v672_v28, %v670_v26 }
 0x31f   : > { %434 = vst.msk [vmem:[%s268_s12] sm:$0xff] %vm433_vm3, %v432_v29 }
 0x320   : > { %766 = shalt.err (!%p763_p9)
}
 0x321   : > { %s767_s17 = scalar_lea.hbm %s447_s28, 128  ;;  %s771_s26 = scalar_lea.hbm %s1041_s5, 256 }
 0x322   : > { %p768_p13 = scmp.ne.s32.totalorder %s447_s28, %s767_s17  ;;  %p772_p4 = scmp.lt.s32.totalorder %s447_s28, %s1041_s5 }
 0x323   : > { %p773_p8 = scmp.lt.s32.totalorder %s771_s26, %s767_s17 }
 0x324   : > { %p769_p5 = pnand %p768_p13, %p1057_p0 }
 0x325   : > { %p774_p3 = por %p773_p8, %p772_p4 }
 0x326   : > { %p770_p10 = pneg %p769_p5 }
 0x328   : > { %p775_p11 = pnand %p774_p3, %p770_p10 }
 0x32a   : > { %778 = shalt.err (!%p775_p11)
}
 0x32b   : > { %602 = dma.vmem_to_hbm [thread:$0]  (%p1057_p0), %s450_s30, 128, %s447_s28, %s436_s7  }
 0x32c PF: > { %s461_s11 = sand.u32 1, %s809_s18   ;;  %p1058_p1 = scmp.ne.s32.totalorder %s1047_s25, 0 }
 0x32d   : > { %p1059_p2 = scmp.ge.s32.totalorder %s821_s21, 2  ;;  %s462_s12 = scalar_lea.sflag [#allocation4], %s461_s11 }
 0x32f   : > { %p616_p6 = pnand %p1059_p2, %p1058_p1 }
 0x331   : > { %p617_p12 = pneg %p616_p6 }
 0x333   : > { %804 = dma.done.wait (%p617_p12), %s462_s12, 128  }
 0x334   : > { %806 = vsyncadd (%p617_p12), %s462_s12, 4294967168  ;;  %p19_p7 = scmp.ge.s32.totalorder %s933_s15, 4   ;;  %s1060_s18 = smov %s813_s19 }
 0x335   : > { %s1061_s19 = smov %s817_s20  ;;  %s1062_s20 = smov %s949_s27 }
 0x336   : > { %s1063_s21 = smov %s933_s15  ;;  %21 = sbr.rel (!%p19_p7) target bundleno = 6 (0x6), region = 93 }
 0x33b   :  { %467 = vsyncpa [#allocation3], 1 }
 0x33c   :  { %469 = vsyncpa [#allocation3 + $0x1], 1 }
 0x33d   :  { %470 = vsyncpa [#allocation6], 1 }
 0x33e   :  { %471 = vsyncpa [#allocation4], 1 }
 0x33f   :  { %473 = vsyncpa [#allocation4 + $0x1], 1 }

</bundles_post_ra>
